<compile_context>
chip_gen: v7x
topology: tpu7x:2x2x1
jax: 0.10.0
libtpu: 0.0.40
codegen_flags: <defaults>
</compile_context>

<pallas_src>
import jax
import jax.numpy as jnp
from jax import lax
from jax.experimental import pallas as pl
from jax.experimental.pallas import tpu as pltpu


def _round_up(x, m):
    return (x + m - 1) // m * m


# Fuse the two Q heads into one block-diagonal matmul chain only while the
# fused width (2H) fits a single MXU tile on every generation (128 on v5e).
_FUSE_MAX_WIDTH = 128
# Hidden stacks longer than this use lax.fori_loop instead of full unrolling.
_MAX_UNROLL_LAYERS = 4


# ---------------------------------------------------------------------------
# Kernels
# ---------------------------------------------------------------------------
def _hidden_stack(h, num_hidden, load_w, load_b, wdt):
    """Apply num_hidden layers of ReLU(h @ W_l + b_l).

    Short stacks are unrolled (LLO scheduler visibility); deep stacks use a
    fori_loop with dynamic leading-axis weight loads so live ranges stay
    bounded and don't spill.
    """
    def layer(l, h):
        return jnp.maximum(
            jnp.dot(h.astype(wdt), load_w(l), preferred_element_type=jnp.float32)
            + load_b(l), 0.0)

    if num_hidden <= _MAX_UNROLL_LAYERS:
        for l in range(num_hidden):
            h = layer(l, h)
        return h
    return lax.fori_loop(0, num_hidden, layer, h)


def qnet_kernel_fused(xs_ref, xa_ref,
                      w_in_s_ref, w_in_a_ref, b_in_ref,
                      w_hid_ref, b_hid_ref,
                      w_out_ref, b_out_ref,
                      out_ref):
    """Fused twin-Q MLP (both heads side by side, width 2H; hidden weights are
    block-diagonal so the heads stay independent).  Output layer is one MXU
    matmul against a (2H, 2) packed weight: q1 -> column 0, q2 -> column 1."""
    wdt = w_in_s_ref.dtype   # weight dtype (bf16 or f32); accumulation is f32

    # Input layer: [state | action] @ [W_s ; W_a] == state @ W_s + action @ W_a
    h = (jnp.dot(xs_ref[...].astype(wdt), w_in_s_ref[...],
                 preferred_element_type=jnp.float32)
         + jnp.dot(xa_ref[...].astype(wdt), w_in_a_ref[...],
                   preferred_element_type=jnp.float32)
         + b_in_ref[...])
    h = jnp.maximum(h, 0.0)

    h = _hidden_stack(h, w_hid_ref.shape[0],
                      lambda l: w_hid_ref[l], lambda l: b_hid_ref[l], wdt)

    # Output layer as a single (tile_b, 2H) @ (2H, 2) MXU matmul.
    out_ref[...] = (jnp.dot(h.astype(wdt), w_out_ref[...],
                            preferred_element_type=jnp.float32)
                    + b_out_ref[...])


def qnet_kernel_split(xs_ref, xa_ref,
                      w_in_s_ref, w_in_a_ref, b_in_ref,
                      w_hid_ref, b_hid_ref,
                      w_out_ref, b_out_ref,
                      out_ref):
    """Per-head twin-Q MLP for wide hidden layers (2H > one MXU tile): each
    hidden layer runs as two (H, H) dots instead of one block-diagonal
    (2H, 2H) dot, halving MXU pushes and weight bytes vs. the fused form.
    Per-head output weights are (H, 2) with the live column at 0 (head 1) or
    1 (head 2), so the two head results just add into the (tile_b, 2) slab."""
    wdt = w_in_s_ref.dtype
    xs = xs_ref[...].astype(wdt)
    xa = xa_ref[...].astype(wdt)
    num_hidden = w_hid_ref.shape[1]     # w_hid: (2, L, H, H)

    def head(hidx):
        h = (jnp.dot(xs, w_in_s_ref[hidx], preferred_element_type=jnp.float32)
             + jnp.dot(xa, w_in_a_ref[hidx], preferred_element_type=jnp.float32)
             + b_in_ref[hidx])
        h = jnp.maximum(h, 0.0)
        h = _hidden_stack(h, num_hidden,
                          lambda l: w_hid_ref[hidx, l],
                          lambda l: b_hid_ref[hidx, l], wdt)
        return jnp.dot(h.astype(wdt), w_out_ref[hidx],
                       preferred_element_type=jnp.float32)

    out_ref[...] = head(0) + head(1) + b_out_ref[...]


# ---------------------------------------------------------------------------
# Parameter init (mirrors QNetwork.__init__, int hidden_dim path) and packing
# ---------------------------------------------------------------------------
def xavier_uniform(key, fan_in, fan_out, gain=1.0):
    # matches torch.nn.init.xavier_uniform_ (gain * sqrt(6/(fan_in+fan_out)))
    bound = gain * jnp.sqrt(6.0 / (fan_in + fan_out))
    return jax.random.uniform(key, (fan_in, fan_out), jnp.float32, -bound, bound)


def init_qnetwork_params(key, num_inputs, num_actions, hidden_dim, num_layers):
    """Per-head params equivalent to the PyTorch module (weights (in, out), biases 0)."""
    # TODO(synk): only the int hidden_dim variant is supported; the list-valued
    # per-layer-width variant of the module is not packed here.
    d_in = num_inputs + num_actions
    n_hidden = num_layers - 1
    assert n_hidden >= 1, "num_layers must be >= 2 (at least one hidden layer)"
    keys = jax.random.split(key, 2 * (2 + n_hidden))
    k = iter(keys)

    def make_head():
        w_in = xavier_uniform(next(k), d_in, hidden_dim)
        b_in = jnp.zeros((1, hidden_dim), jnp.float32)
        w_hid = jnp.stack([xavier_uniform(next(k), hidden_dim, hidden_dim)
                           for _ in range(n_hidden)], axis=0)          # (L, H, H)
        b_hid = jnp.zeros((n_hidden, 1, hidden_dim), jnp.float32)      # (L, 1, H)
        w_out = xavier_uniform(next(k), hidden_dim, 1)                 # (H, 1)
        b_out = jnp.zeros((1, 1), jnp.float32)
        return (w_in, b_in, w_hid, b_hid, w_out, b_out)

    return make_head() + make_head()   # Q1 params followed by Q2 params


def _block_diag2(a, b):
    za = jnp.zeros((a.shape[0], b.shape[1]), a.dtype)
    zb = jnp.zeros((b.shape[0], a.shape[1]), a.dtype)
    return jnp.concatenate([jnp.concatenate([a, za], axis=1),
                            jnp.concatenate([zb, b], axis=1)], axis=0)


def pack_params(params, num_inputs, weight_dtype=jnp.bfloat16):
    """Pack per-head params into the kernel layout.

    Heads are fused into one block-diagonal chain only while 2H <= 128 (one
    MXU tile on every generation); otherwise they stay separate ("split").
    Weights are cast to `weight_dtype` (bf16 by default); biases stay f32.
    """
    (w1_in, b1_in, w1_hid, b1_hid, w1_out, b1_out,
     w2_in, b2_in, w2_hid, b2_hid, w2_out, b2_out) = params
    H = w1_in.shape[1]
    L = w1_hid.shape[0]
    wd = weight_dtype
    fused = (2 * H) <= _FUSE_MAX_WIDTH

    if fused:
        w_in = jnp.concatenate([w1_in, w2_in], axis=1)                 # (D, 2H)
        w_in_s = w_in[:num_inputs].astype(wd)                          # (S, 2H)
        w_in_a = w_in[num_inputs:].astype(wd)                          # (A, 2H)
        b_in = jnp.concatenate([b1_in, b2_in], axis=1)                 # (1, 2H)
        w_hid = jnp.stack([_block_diag2(w1_hid[l], w2_hid[l])
                           for l in range(L)], axis=0).astype(wd)      # (L, 2H, 2H)
        b_hid = jnp.concatenate([b1_hid, b2_hid], axis=2)              # (L, 1, 2H)
        w_out = jnp.zeros((2 * H, 2), jnp.float32)                     # (2H, 2)
        w_out = w_out.at[:H, 0].set(w1_out[:, 0])
        w_out = w_out.at[H:, 1].set(w2_out[:, 0]).astype(wd)
    else:
        w_in_s = jnp.stack([w1_in[:num_inputs], w2_in[:num_inputs]], 0).astype(wd)  # (2,S,H)
        w_in_a = jnp.stack([w1_in[num_inputs:], w2_in[num_inputs:]], 0).astype(wd)  # (2,A,H)
        b_in = jnp.stack([b1_in, b2_in], axis=0)                       # (2, 1, H)
        w_hid = jnp.stack([w1_hid, w2_hid], axis=0).astype(wd)         # (2, L, H, H)
        b_hid = jnp.stack([b1_hid, b2_hid], axis=0)                    # (2, L, 1, H)
        w_out = jnp.zeros((2, H, 2), jnp.float32)                      # (2, H, 2)
        w_out = w_out.at[0, :, 0].set(w1_out[:, 0])
        w_out = w_out.at[1, :, 1].set(w2_out[:, 0]).astype(wd)

    b_out = jnp.concatenate([b1_out, b2_out], axis=1)                  # (1, 2)
    return dict(w_in_s=w_in_s, w_in_a=w_in_a, b_in=b_in,
                w_hid=w_hid, b_hid=b_hid, w_out=w_out, b_out=b_out)


# ---------------------------------------------------------------------------
# Wrapper
# ---------------------------------------------------------------------------
def _choose_batch_tiling(batch, max_tile=512):
    """Pick (tile_b, padded_batch): >=2 grid steps when batch > 8 so the
    "parallel" batch axis can shard across v7x's two TensorCores, and tile_b
    sized to minimize padding waste for awkward batch sizes."""
    if batch <= 8:
        t = _round_up(batch, 8)
        return t, t
    n_tiles = max(2, pl.cdiv(batch, max_tile))
    tile_b = _round_up(pl.cdiv(batch, n_tiles), 8)
    return tile_b, tile_b * n_tiles


@jax.jit
def qnetwork_forward(state, action, packed):
    w_in_s, w_in_a = packed["w_in_s"], packed["w_in_a"]
    b_in, w_hid, b_hid = packed["b_in"], packed["w_hid"], packed["b_hid"]
    w_out, b_out = packed["w_out"], packed["b_out"]
    fused = (w_hid.ndim == 3)            # (L,2H,2H) fused vs (2,L,H,H) split

    batch, num_inputs = state.shape
    num_actions = action.shape[1]
    if fused:
        H = w_in_s.shape[1] // 2
        n_hidden = w_hid.shape[0]
    else:
        H = w_in_s.shape[2]
        n_hidden = w_hid.shape[1]

    tile_b, padded = _choose_batch_tiling(batch)
    if padded != batch:
        pad = padded - batch
        state = jnp.pad(state, ((0, pad), (0, 0)))
        action = jnp.pad(action, ((0, pad), (0, 0)))
    grid = (padded // tile_b,)

    def rep(ndim):
        return lambda i: (0,) * ndim     # weights: constant block -> VMEM-resident

    # TODO(synk): the caller could hand a pre-packed (batch, S+A) buffer to merge
    # the two narrow input streams / input-layer dots into one (minor win).
    in_specs = [
        pl.BlockSpec((tile_b, num_inputs), lambda i: (i, 0)),
        pl.BlockSpec((tile_b, num_actions), lambda i: (i, 0)),
        pl.BlockSpec(w_in_s.shape, rep(w_in_s.ndim)),
        pl.BlockSpec(w_in_a.shape, rep(w_in_a.ndim)),
        pl.BlockSpec(b_in.shape, rep(b_in.ndim)),
        # TODO(synk): for very large L*H (resident weights approaching the VMEM
        # budget, esp. v7x's 64 MiB) stream w_hid layer-by-layer via an extra
        # "arbitrary" grid axis instead of keeping the full stack resident.
        pl.BlockSpec(w_hid.shape, rep(w_hid.ndim)),
        pl.BlockSpec(b_hid.shape, rep(b_hid.ndim)),
        pl.BlockSpec(w_out.shape, rep(w_out.ndim)),
        pl.BlockSpec(b_out.shape, rep(b_out.ndim)),
    ]
    # Narrow (tile_b, 2) output: masked stores, but 64x fewer HBM bytes than a
    # 128-lane slab and a tiny double-buffered output footprint.
    out_specs = pl.BlockSpec((tile_b, 2), lambda i: (i, 0))

    weight_bytes = sum(int(a.size) * a.dtype.itemsize
                       for a in (w_in_s, w_in_a, b_in, w_hid, b_hid, w_out, b_out))
    flops = 2 * padded * 2 * ((num_inputs + num_actions) * H + n_hidden * H * H + H)
    bytes_accessed = 4 * padded * (num_inputs + num_actions + 2) + weight_bytes
    cost = pl.CostEstimate(flops=flops, transcendentals=0,
                           bytes_accessed=bytes_accessed)

    # Scoped VMEM sized from actual residency (double-buffered weights + I/O
    # tiles) with headroom; never below the 32 MiB default, capped at 64 MiB
    # so it stays within v7x's physical VMEM.
    io_tile_bytes = 4 * tile_b * (num_inputs + num_actions + 2)
    needed = 2 * (weight_bytes + io_tile_bytes) + (2 << 20)
    vmem_limit = int(max(32 << 20, min(needed, 64 << 20)))

    kernel = qnet_kernel_fused if fused else qnet_kernel_split
    out = pl.pallas_call(
        kernel,
        out_shape=jax.ShapeDtypeStruct((padded, 2), jnp.float32),
        grid=grid,
        in_specs=in_specs,
        out_specs=out_specs,
        compiler_params=pltpu.CompilerParams(
            dimension_semantics=("parallel",),
            vmem_limit_bytes=vmem_limit),
        cost_estimate=cost,
    )(state, action, w_in_s, w_in_a, b_in, w_hid, b_hid, w_out, b_out)

    return out[:batch, 0:1], out[:batch, 1:2]


# ---------------------------------------------------------------------------
# Pure-JAX reference (mirrors the PyTorch forward; optional weight-dtype cast)
# ---------------------------------------------------------------------------
def ref_forward(state, action, params, weight_dtype=jnp.float32):
    x = jnp.concatenate([state, action], axis=1)

    def head(p):
        w_in, b_in, w_hid, b_hid, w_out, b_out = p
        c = lambda a: a.astype(weight_dtype)
        h = jnp.maximum(jnp.dot(c(x), c(w_in),
                                preferred_element_type=jnp.float32) + b_in, 0.0)
        for l in range(w_hid.shape[0]):
            h = jnp.maximum(jnp.dot(c(h), c(w_hid[l]),
                                    preferred_element_type=jnp.float32) + b_hid[l], 0.0)
        return jnp.dot(c(h), c(w_out), preferred_element_type=jnp.float32) + b_out

    return head(params[:6]), head(params[6:])


# ---------------------------------------------------------------------------
# Smoke test + reference check
# ---------------------------------------------------------------------------
if __name__ == "__main__":
    configs = [
        # Fused path (2H=64 <= 128), 1 hidden layer, single tiny tile.
        dict(batch=8, num_inputs=24, num_actions=8, hidden_dim=32, num_layers=2),
        # Split path (2H=192 > 128), deep stack (fori_loop), multi-tile batch
        # with row padding (300 -> 2 tiles of 152).
        dict(batch=300, num_inputs=17, num_actions=6, hidden_dim=96, num_layers=7),
    ]

    key = jax.random.PRNGKey(0)
    for ci, cfg in enumerate(configs):
        key, k_state, k_action, k_params, k_bias = jax.random.split(key, 5)
        state = jax.random.normal(k_state, (cfg["batch"], cfg["num_inputs"]), jnp.float32)
        action = jax.random.normal(k_action, (cfg["batch"], cfg["num_actions"]), jnp.float32)

        params = list(init_qnetwork_params(k_params, cfg["num_inputs"],
                                           cfg["num_actions"], cfg["hidden_dim"],
                                           cfg["num_layers"]))
        # The module initializes biases to 0; perturb them so the numerical
        # check also exercises the bias packing + in-kernel bias adds.
        bias_idx = [1, 3, 5, 7, 9, 11]
        bkeys = jax.random.split(k_bias, len(bias_idx))
        for bk, idx in zip(bkeys, bias_idx):
            params[idx] = 0.1 * jax.random.normal(bk, params[idx].shape, jnp.float32)
        params = tuple(params)

        # f32 weights: tight check vs. the f32 reference.
        # bf16 weights (fast path): check vs. a bf16-casting reference (same
        # products, f32 accumulation -> only summation-order differences).
        for wdt, atol, rtol in ((jnp.float32, 5e-4, 5e-4),
                                (jnp.bfloat16, 5e-3, 5e-3)):
            packed = pack_params(params, cfg["num_inputs"], weight_dtype=wdt)
            q1, q2 = qnetwork_forward(state, action, packed)
            jax.block_until_ready((q1, q2))

            r1, r2 = ref_forward(state, action, params, weight_dtype=wdt)
            assert q1.shape == (cfg["batch"], 1) and q2.shape == (cfg["batch"], 1)
            assert jnp.allclose(q1, r1, atol=atol, rtol=rtol), (
                "q1 mismatch", ci, str(wdt), float(jnp.max(jnp.abs(q1 - r1))))
            assert jnp.allclose(q2, r2, atol=atol, rtol=rtol), (
                "q2 mismatch", ci, str(wdt), float(jnp.max(jnp.abs(q2 - r2))))

    print("KERNEL_OK")
</pallas_src>

<mosaic_0001>
module attributes {stable_mosaic.version = 11 : i64} {
  func.func @qnet_kernel_fused(%arg0: i32, %arg1: memref<8x24xf32, #tpu.memory_space<vmem>>, %arg2: memref<8x8xf32, #tpu.memory_space<vmem>>, %arg3: memref<24x64xf32, #tpu.memory_space<vmem>>, %arg4: memref<8x64xf32, #tpu.memory_space<vmem>>, %arg5: memref<1x64xf32, #tpu.memory_space<vmem>>, %arg6: memref<1x64x64xf32, #tpu.memory_space<vmem>>, %arg7: memref<1x1x64xf32, #tpu.memory_space<vmem>>, %arg8: memref<64x2xf32, #tpu.memory_space<vmem>>, %arg9: memref<1x2xf32, #tpu.memory_space<vmem>>, %arg10: memref<8x2xf32, #tpu.memory_space<vmem>>) attributes {dimension_semantics = [#tpu.dimension_semantics<parallel>], iteration_bounds = array<i64: 1>, scalar_prefetch = 0 : i64, scratch_operands = 0 : i64, tpu.core_type = #tpu.core_type<tc>, window_params = [{transform_indices = @transform_0, window_bounds = array<i64: 8, 24>}, {transform_indices = @transform_1, window_bounds = array<i64: 8, 8>}, {pipeline_mode = #tpu.pipeline_mode<synchronous>, transform_indices = @transform_2, window_bounds = array<i64: 24, 64>}, {pipeline_mode = #tpu.pipeline_mode<synchronous>, transform_indices = @transform_3, window_bounds = array<i64: 8, 64>}, {pipeline_mode = #tpu.pipeline_mode<synchronous>, transform_indices = @transform_4, window_bounds = array<i64: 1, 64>}, {pipeline_mode = #tpu.pipeline_mode<synchronous>, transform_indices = @transform_5, window_bounds = array<i64: 1, 64, 64>}, {pipeline_mode = #tpu.pipeline_mode<synchronous>, transform_indices = @transform_6, window_bounds = array<i64: 1, 1, 64>}, {pipeline_mode = #tpu.pipeline_mode<synchronous>, transform_indices = @transform_7, window_bounds = array<i64: 64, 2>}, {pipeline_mode = #tpu.pipeline_mode<synchronous>, transform_indices = @transform_8, window_bounds = array<i64: 1, 2>}, {transform_indices = @transform_9, window_bounds = array<i64: 8, 2>}]} {
    %c0 = arith.constant 0 : index
    %c0_0 = arith.constant 0 : index
    %0 = vector.load %arg1[%c0, %c0_0] : memref<8x24xf32, #tpu.memory_space<vmem>>, vector<8x24xf32>
    %c0_1 = arith.constant 0 : index
    %c0_2 = arith.constant 0 : index
    %1 = vector.load %arg3[%c0_1, %c0_2] : memref<24x64xf32, #tpu.memory_space<vmem>>, vector<24x64xf32>
    %cst = arith.constant dense<0.000000e+00> : vector<8x64xf32>
    %2 = tpu.matmul %0, %1, %cst {dimension_numbers = #tpu.dot_dimension_numbers<[1], [0], [0], [1], [0, 0, 1, 1], [], []>} : vector<8x24xf32>, vector<24x64xf32>, vector<8x64xf32> -> vector<8x64xf32>
    %c0_3 = arith.constant 0 : index
    %c0_4 = arith.constant 0 : index
    %3 = vector.load %arg2[%c0_3, %c0_4] : memref<8x8xf32, #tpu.memory_space<vmem>>, vector<8x8xf32>
    %c0_5 = arith.constant 0 : index
    %c0_6 = arith.constant 0 : index
    %4 = vector.load %arg4[%c0_5, %c0_6] : memref<8x64xf32, #tpu.memory_space<vmem>>, vector<8x64xf32>
    %cst_7 = arith.constant dense<0.000000e+00> : vector<8x64xf32>
    %5 = tpu.matmul %3, %4, %cst_7 {dimension_numbers = #tpu.dot_dimension_numbers<[1], [0], [0], [1], [0, 0, 1, 1], [], []>} : vector<8x8xf32>, vector<8x64xf32>, vector<8x64xf32> -> vector<8x64xf32>
    %6 = arith.addf %2, %5 : vector<8x64xf32>
    %c0_8 = arith.constant 0 : index
    %c0_9 = arith.constant 0 : index
    %7 = vector.load %arg5[%c0_8, %c0_9] : memref<1x64xf32, #tpu.memory_space<vmem>>, vector<1x64xf32>
    %8 = vector.broadcast %7 : vector<1x64xf32> to vector<8x64xf32>
    %9 = arith.addf %6, %8 : vector<8x64xf32>
    %cst_10 = arith.constant 0.000000e+00 : f32
    %10 = vector.broadcast %cst_10 : f32 to vector<8x64xf32>
    %11 = arith.maximumf %9, %10 : vector<8x64xf32>
    %c0_11 = arith.constant 0 : index
    %c0_12 = arith.constant 0 : index
    %c0_13 = arith.constant 0 : index
    %12 = vector.load %arg6[%c0_11, %c0_12, %c0_13] : memref<1x64x64xf32, #tpu.memory_space<vmem>>, vector<1x64x64xf32>
    %13 = vector.shape_cast %12 : vector<1x64x64xf32> to vector<64x64xf32>
    %cst_14 = arith.constant dense<0.000000e+00> : vector<8x64xf32>
    %14 = tpu.matmul %11, %13, %cst_14 {dimension_numbers = #tpu.dot_dimension_numbers<[1], [0], [0], [1], [0, 0, 1, 1], [], []>} : vector<8x64xf32>, vector<64x64xf32>, vector<8x64xf32> -> vector<8x64xf32>
    %c0_15 = arith.constant 0 : index
    %c0_16 = arith.constant 0 : index
    %c0_17 = arith.constant 0 : index
    %15 = vector.load %arg7[%c0_15, %c0_16, %c0_17] : memref<1x1x64xf32, #tpu.memory_space<vmem>>, vector<1x1x64xf32>
    %16 = vector.shape_cast %15 : vector<1x1x64xf32> to vector<1x64xf32>
    %17 = vector.broadcast %16 : vector<1x64xf32> to vector<8x64xf32>
    %18 = arith.addf %14, %17 : vector<8x64xf32>
    %cst_18 = arith.constant 0.000000e+00 : f32
    %19 = vector.broadcast %cst_18 : f32 to vector<8x64xf32>
    %20 = arith.maximumf %18, %19 : vector<8x64xf32>
    %c0_19 = arith.constant 0 : index
    %c0_20 = arith.constant 0 : index
    %21 = vector.load %arg8[%c0_19, %c0_20] : memref<64x2xf32, #tpu.memory_space<vmem>>, vector<64x2xf32>
    %cst_21 = arith.constant dense<0.000000e+00> : vector<8x2xf32>
    %22 = tpu.matmul %20, %21, %cst_21 {dimension_numbers = #tpu.dot_dimension_numbers<[1], [0], [0], [1], [0, 0, 1, 1], [], []>} : vector<8x64xf32>, vector<64x2xf32>, vector<8x2xf32> -> vector<8x2xf32>
    %c0_22 = arith.constant 0 : index
    %c0_23 = arith.constant 0 : index
    %23 = vector.load %arg9[%c0_22, %c0_23] : memref<1x2xf32, #tpu.memory_space<vmem>>, vector<1x2xf32>
    %24 = vector.broadcast %23 : vector<1x2xf32> to vector<8x2xf32>
    %25 = arith.addf %22, %24 : vector<8x2xf32>
    %c0_24 = arith.constant 0 : index
    %c0_25 = arith.constant 0 : index
    %26 = vector.load %arg10[%c0_24, %c0_25] : memref<8x2xf32, #tpu.memory_space<vmem>>, vector<8x2xf32>
    tpu.vector_store %arg10[%c0_24, %c0_25], %25 {strides = array<i32>} : memref<8x2xf32, #tpu.memory_space<vmem>>, vector<8x2xf32>,
    return
  }
  func.func @transform_0(%arg0: i32) -> (i32, i32) {
    %c0_i32 = arith.constant 0 : i32
    %c0_i32_0 = arith.constant 0 : i32
    return %arg0, %c0_i32 : i32, i32
  }
  func.func @transform_1(%arg0: i32) -> (i32, i32) {
    %c0_i32 = arith.constant 0 : i32
    %c0_i32_0 = arith.constant 0 : i32
    return %arg0, %c0_i32 : i32, i32
  }
  func.func @transform_2(%arg0: i32) -> (i32, i32) {
    %c0_i32 = arith.constant 0 : i32
    %c0_i32_0 = arith.constant 0 : i32
    %c0_i32_1 = arith.constant 0 : i32
    return %c0_i32, %c0_i32_0 : i32, i32
  }
  func.func @transform_3(%arg0: i32) -> (i32, i32) {
    %c0_i32 = arith.constant 0 : i32
    %c0_i32_0 = arith.constant 0 : i32
    %c0_i32_1 = arith.constant 0 : i32
    return %c0_i32, %c0_i32_0 : i32, i32
  }
  func.func @transform_4(%arg0: i32) -> (i32, i32) {
    %c0_i32 = arith.constant 0 : i32
    %c0_i32_0 = arith.constant 0 : i32
    %c0_i32_1 = arith.constant 0 : i32
    return %c0_i32, %c0_i32_0 : i32, i32
  }
  func.func @transform_5(%arg0: i32) -> (i32, i32, i32) {
    %c0_i32 = arith.constant 0 : i32
    %c0_i32_0 = arith.constant 0 : i32
    %c0_i32_1 = arith.constant 0 : i32
    %c0_i32_2 = arith.constant 0 : i32
    return %c0_i32, %c0_i32_0, %c0_i32_1 : i32, i32, i32
  }
  func.func @transform_6(%arg0: i32) -> (i32, i32, i32) {
    %c0_i32 = arith.constant 0 : i32
    %c0_i32_0 = arith.constant 0 : i32
    %c0_i32_1 = arith.constant 0 : i32
    %c0_i32_2 = arith.constant 0 : i32
    return %c0_i32, %c0_i32_0, %c0_i32_1 : i32, i32, i32
  }
  func.func @transform_7(%arg0: i32) -> (i32, i32) {
    %c0_i32 = arith.constant 0 : i32
    %c0_i32_0 = arith.constant 0 : i32
    %c0_i32_1 = arith.constant 0 : i32
    return %c0_i32, %c0_i32_0 : i32, i32
  }
  func.func @transform_8(%arg0: i32) -> (i32, i32) {
    %c0_i32 = arith.constant 0 : i32
    %c0_i32_0 = arith.constant 0 : i32
    %c0_i32_1 = arith.constant 0 : i32
    return %c0_i32, %c0_i32_0 : i32, i32
  }
  func.func @transform_9(%arg0: i32) -> (i32, i32) {
    %c0_i32 = arith.constant 0 : i32
    %c0_i32_0 = arith.constant 0 : i32
    return %arg0, %c0_i32 : i32, i32
  }
}

</mosaic_0001>

<bundles_post_ra>
// kernel: qnetwork_forward.1
= control target key start
LH: loop header
LB: loop body
LE: loop exit
PB: predicated region body
PF: predicated region fallthrough
CT: control target
= control target key end

     0   :  { %14 = vsyncpa [#allocation3], 0  ;;  %s907_s0 = inlined_call_operand.hbm [shape: f32[8,24], index: 0, kind: input, shape index: {}]   ;;  %s908_s1 = inlined_call_operand.hbm [shape: f32[8,8], index: 1, kind: input, shape index: {}]   ;;  %s909_s2 = inlined_call_operand.vmem [shape: f32[24,64], index: 2, kind: input, shape index: {}]   ;;  %s910_s3 = inlined_call_operand.hbm [shape: f32[8,64], index: 3, kind: input, shape index: {}]   ;;  %s911_s4 = inlined_call_operand.hbm [shape: f32[1,64], index: 4, kind: input, shape index: {}]   ;;  %s912_s5 = inlined_call_operand.vmem [shape: f32[1,64,64], index: 5, kind: input, shape index: {}]   ;;  %s913_s6 = inlined_call_operand.hbm [shape: f32[1,1,64], index: 6, kind: input, shape index: {}]   ;;  %s914_s7 = inlined_call_operand.vmem [shape: f32[64,2], index: 7, kind: input, shape index: {}]   ;;  %s915_s8 = inlined_call_operand.hbm [shape: f32[1,2], index: 8, kind: input, shape index: {}]   ;;  %s916_s9 = inlined_call_operand.vmem [shape: f32[8,2], index: 9, kind: output, shape index: {}]  }
   0x1   :  { %15 = vsyncpa [#allocation5], 0 }
   0x2   :  { %16 = vsyncpa [#allocation8], 0 }
   0x3   :  { %17 = vsyncpa [#allocation11], 0  ;;  %s712_s30 = smov [#allocation4]   ;;  %s713_s11 = smov [#allocation7]  }
   0x4   :  { %s34_s10 = sshll.u32 %s712_s30, 4  ;;  %s56_s12 = sshll.u32 %s713_s11, 4  ;;  %s35_s10 = int_to_ptr.vmem [resolvable:$true] %s34_s10  ;;  %s57_s12 = int_to_ptr.vmem [resolvable:$true] %s56_s12 }
   0x5   :  { %s572_s15 = scalar_lea.hbm %s908_s1, 128 }
   0x6   :  { %p573_p0 = scmp.ne.s32.totalorder %s908_s1, %s572_s15  ;;  %p576_p1 = scmp.lt.u32.totalorder %s572_s15, %s908_s1 }
   0x8   :  { %p578_p2 = pnand %p576_p1, %p573_p0 }
   0xa   :  { %581 = shalt.err (!%p578_p2)
}
   0xb   :  { %s582_s20 = scalar_lea.vmem %s35_s10, 128  ;;  %p587_p4 = scmp.lt.s32.totalorder %s35_s10, %s35_s10 }
   0xc   :  { %p583_p3 = scmp.ne.s32.totalorder %s35_s10, %s582_s20  ;;  %p588_p5 = scmp.lt.s32.totalorder %s582_s20, %s582_s20 }
   0xe   :  { %p589_p6 = por %p588_p5, %p587_p4 }
  0x10   :  { %p590_p7 = pnand %p589_p6, %p583_p3 }
  0x12   :  { %593 = shalt.err (!%p590_p7)
}
  0x13   :  { %37 = dma.hbm_to_vmem [thread:$0]  %s908_s1, 128, %s35_s10, [#allocation5]  }
  0x14   :  { %s594_s25 = scalar_lea.hbm %s911_s4, 16 }
  0x15   :  { %p595_p8 = scmp.ne.s32.totalorder %s911_s4, %s594_s25  ;;  %p598_p9 = scmp.lt.u32.totalorder %s594_s25, %s911_s4 }
  0x17   :  { %p600_p10 = pnand %p598_p9, %p595_p8 }
  0x19   :  { %603 = shalt.err (!%p600_p10)
}
  0x1a   :  { %s604_s30 = scalar_lea.vmem %s57_s12, 16  ;;  %s608_s11 = scalar_lea.vmem %s57_s12, 32 }
  0x1b   :  { %p605_p11 = scmp.ne.s32.totalorder %s57_s12, %s604_s30  ;;  %p609_p12 = scmp.lt.s32.totalorder %s57_s12, %s57_s12 }
  0x1c   :  { %p610_p13 = scmp.lt.s32.totalorder %s608_s11, %s604_s30 }
  0x1e   :  { %p611_p0 = por %p610_p13, %p609_p12 }
  0x20   :  { %p612_p1 = pnand %p611_p0, %p605_p11 }
  0x22   :  { %615 = shalt.err (!%p612_p1)
}
  0x23   :  { %59 = dma.hbm_to_vmem [thread:$0]  %s911_s4, 16, %s57_s12, [#allocation8]  }
  0x24   :  { %s714_s13 = smov [#allocation2]   ;;  %s715_s15 = smov [#allocation6]  }
  0x25   :  { %s24_s14 = sshll.u32 %s714_s13, 4  ;;  %s46_s16 = sshll.u32 %s715_s15, 4  ;;  %s25_s14 = int_to_ptr.vmem [resolvable:$true] %s24_s14  ;;  %s47_s16 = int_to_ptr.vmem [resolvable:$true] %s46_s16 }
  0x26   :  { %s616_s19 = scalar_lea.hbm %s907_s0, 128 }
  0x27   :  { %p617_p2 = scmp.ne.s32.totalorder %s907_s0, %s616_s19  ;;  %p620_p3 = scmp.lt.u32.totalorder %s616_s19, %s907_s0 }
  0x29   :  { %p622_p4 = pnand %p620_p3, %p617_p2 }
  0x2b   :  { %625 = shalt.err (!%p622_p4)
}
  0x2c   :  { %s626_s4 = scalar_lea.vmem %s25_s14, 128  ;;  %p631_p6 = scmp.lt.s32.totalorder %s25_s14, %s25_s14 }
  0x2d   :  { %p627_p5 = scmp.ne.s32.totalorder %s25_s14, %s626_s4  ;;  %p632_p7 = scmp.lt.s32.totalorder %s626_s4, %s626_s4 }
  0x2f   :  { %p633_p8 = por %p632_p7, %p631_p6 }
  0x31   :  { %p634_p9 = pnand %p633_p8, %p627_p5 }
  0x33   :  { %637 = shalt.err (!%p634_p9)
}
  0x34   :  { %27 = dma.hbm_to_vmem [thread:$0]  %s907_s0, 128, %s25_s14, [#allocation3]  }
  0x35   :  { %s638_s27 = scalar_lea.hbm %s910_s3, 128 }
  0x36   :  { %p639_p10 = scmp.ne.s32.totalorder %s910_s3, %s638_s27  ;;  %p642_p11 = scmp.lt.u32.totalorder %s638_s27, %s910_s3 }
  0x38   :  { %p644_p12 = pnand %p642_p11, %p639_p10 }
  0x3a   :  { %647 = shalt.err (!%p644_p12)
}
  0x3b   :  { %s648_s1 = scalar_lea.vmem %s47_s16, 128  ;;  %p653_p0 = scmp.lt.s32.totalorder %s47_s16, %s47_s16 }
  0x3c   :  { %p649_p13 = scmp.ne.s32.totalorder %s47_s16, %s648_s1  ;;  %p654_p1 = scmp.lt.s32.totalorder %s648_s1, %s648_s1 }
  0x3e   :  { %p655_p2 = por %p654_p1, %p653_p0 }
  0x40   :  { %p656_p3 = pnand %p655_p2, %p649_p13 }
  0x42   :  { %659 = shalt.err (!%p656_p3)
}
  0x43   :  { %49 = dma.hbm_to_vmem [thread:$0]  %s910_s3, 128, %s47_s16, [#allocation5]  }
  0x44   :  { %s716_s13 = smov [#allocation9]   ;;  %s717_s15 = smov [#allocation10]  }
  0x45   :  { %s68_s14 = sshll.u32 %s716_s13, 4  ;;  %s80_s17 = sshll.u32 %s717_s15, 4  ;;  %s69_s14 = int_to_ptr.vmem [resolvable:$true] %s68_s14  ;;  %s81_s17 = int_to_ptr.vmem [resolvable:$true] %s80_s17 }
  0x46   :  { %s660_s20 = scalar_lea.hbm %s913_s6, 16 }
  0x47   :  { %p661_p4 = scmp.ne.s32.totalorder %s913_s6, %s660_s20  ;;  %p664_p5 = scmp.lt.u32.totalorder %s660_s20, %s913_s6 }
  0x49   :  { %p666_p6 = pnand %p664_p5, %p661_p4 }
  0x4b   :  { %669 = shalt.err (!%p666_p6)
}
  0x4c   :  { %s670_s3 = scalar_lea.vmem %s69_s14, 16  ;;  %s674_s16 = scalar_lea.vmem %s69_s14, 32 }
  0x4d   :  { %p671_p7 = scmp.ne.s32.totalorder %s69_s14, %s670_s3  ;;  %p675_p8 = scmp.lt.s32.totalorder %s69_s14, %s69_s14 }
  0x4e   :  { %p676_p9 = scmp.lt.s32.totalorder %s674_s16, %s670_s3 }
  0x50   :  { %p677_p10 = por %p676_p9, %p675_p8 }
  0x52   :  { %p678_p11 = pnand %p677_p10, %p671_p7 }
  0x54   :  { %681 = shalt.err (!%p678_p11)
}
  0x55   :  { %71 = dma.hbm_to_vmem [thread:$0]  %s913_s6, 16, %s69_s14, [#allocation8]  }
  0x56   :  { %s682_s27 = scalar_lea.hbm %s915_s8, 16 }
  0x57   :  { %p683_p12 = scmp.ne.s32.totalorder %s915_s8, %s682_s27  ;;  %p686_p13 = scmp.lt.u32.totalorder %s682_s27, %s915_s8 }
  0x59   :  { %p688_p0 = pnand %p686_p13, %p683_p12 }
  0x5b   :  { %691 = shalt.err (!%p688_p0)
}
  0x5c   :  { %s692_s1 = scalar_lea.vmem %s81_s17, 16  ;;  %s696_s0 = scalar_lea.vmem %s81_s17, 32 }
  0x5d   :  { %p693_p1 = scmp.ne.s32.totalorder %s81_s17, %s692_s1  ;;  %p697_p2 = scmp.lt.s32.totalorder %s81_s17, %s81_s17 }
  0x5e   :  { %p698_p3 = scmp.lt.s32.totalorder %s696_s0, %s692_s1 }
  0x60   :  { %p699_p4 = por %p698_p3, %p697_p2 }
  0x62   :  { %p700_p5 = pnand %p699_p4, %p693_p1 }
  0x64   :  { %703 = shalt.err (!%p700_p5)
}
  0x65   :  { %83 = dma.hbm_to_vmem [thread:$0]  %s915_s8, 16, %s81_s17, [#allocation11]  }
  0x66   :  { %704 = dma.done.wait [#allocation3], 128  }
  0x67   :  { %705 = vsyncadd [#allocation3], 4294967168 }
  0x68   :  { %706 = dma.done.wait [#allocation5], 256  }
  0x69   :  { %707 = vsyncadd [#allocation5], 4294967040 }
  0x6a   :  { %708 = dma.done.wait [#allocation8], 32  }
  0x6b   :  { %709 = vsyncadd [#allocation8], 4294967264 }
  0x6c   :  { %710 = dma.done.wait [#allocation11], 16  }
  0x6d   :  { %711 = vsyncadd [#allocation11], 4294967280  ;;  %v718_v0 = vmov 0.0|0.0   ;;  %v719_v1 = vmov 0.0   ;;  %vm720_vm0 = vmmov 0   ;;  %vm108_vm1 = vcmask 64512  }
  0x6e   :  { %536 = vmatprep.subr.bf16.mxu1 %v718_v0  ;;  %484 = vmatprep.subr.mxu0 %v719_v1  ;;  %v103_v2 = vld [vmem:[%s909_s2] sm:$0xff]  ;;  %v104_v3 = vld [vmem:[%s909_s2 + $0x8] sm:$0xff]  ;;  %v107_v4 = vld [vmem:[#allocation6] sm:$0xff]  ;;  %vm182_vm2 = vcmask 195584   ;;  %vm280_vm3 = vcmask 523264   ;;  %vm443_vm4 = vcmask 15360  }
  0x6f   :  { %486 = vmatprep.mubr.msk.f32.mxu0 %vm720_vm0, %v719_v1  ;;  %495 = vmatprep.mubr.msk.f32.mxu1 %vm720_vm0, %v719_v1  ;;  %v537_v5 = vpack.c.bf16 %v104_v3, %v103_v2  ;;  %v106_v6 = vld [vmem:[#allocation4] sm:$0xff]  ;;  %v265_v7 = vld [vmem:[%s912_s5] sm:$0xff]  ;;  %v267_v9 = vld [vmem:[%s912_s5 + $0x10] sm:$0xff] }
  0x70   :  { %485 = vmatpush3.msra.mxu0 %v107_v4  ;;  %v266_v8 = vld [vmem:[%s912_s5 + $0x8] sm:$0xff]  ;;  %v268_v11 = vld [vmem:[%s912_s5 + $0x18] sm:$0xff]  ;;  %v105_v12 = vld [vmem:[%s909_s2 + $0x10] sm:$0xff] }
  0x71   :  { %487 = vmatmul.mubr.msk.f32.vlgmr.msra.gmra.mrb[0].mxu0 %vm108_vm1, %v106_v6  ;;  %539 = vmatprep.subr.bf16.mxu0 %v718_v0  ;;  %v540_v10 = vpack.c.bf16 %v266_v8, %v265_v7  ;;  %v102_v13 = vld [vmem:[#allocation2] sm:$0xff]  ;;  %v543_v14 = vpack.c.bf16 %v268_v11, %v267_v9  ;;  %v270_v16 = vld [vmem:[%s912_s5 + $0x28] sm:$0xff]  ;;  %v271_v18 = vld [vmem:[%s912_s5 + $0x30] sm:$0xff] }
  0x72   :  { %538 = vmatpush3.bf16.msra.mxu1 %v537_v5  ;;  %514 = vmatprep.mubr.msk.f32.mxu0 %vm720_vm0, %v719_v1  ;;  %v269_v15 = vld [vmem:[%s912_s5 + $0x20] sm:$0xff]  ;;  %v272_v19 = vld [vmem:[%s912_s5 + $0x38] sm:$0xff]  ;;  %v356_v22 = vld [vmem:[%s914_s7 + $0x8] sm:$0xff] }
  0x73   :  { %493 = vmatprep.subr.mxu1 %v719_v1  ;;  %541 = vmatpush3.bf16.msra.mxu0 %v540_v10  ;;  %v546_v17 = vpack.c.bf16 %v270_v16, %v269_v15  ;;  %v549_v20 = vpack.c.bf16 %v272_v19, %v271_v18  ;;  %v355_v21 = vld [vmem:[%s914_s7] sm:$0xff]  ;;  %v357_v23 = vld [vmem:[%s914_s7 + $0x10] sm:$0xff]  ;;  %v358_v25 = vld [vmem:[%s914_s7 + $0x18] sm:$0xff] }
  0x74   :  { %542 = vmatprep.subr.bf16.mxu0 %v718_v0  ;;  %v552_v24 = vpack.c.bf16 %v356_v22, %v355_v21  ;;  %v555_v26 = vpack.c.bf16 %v358_v25, %v357_v23  ;;  %v359_v27 = vld [vmem:[%s914_s7 + $0x20] sm:$0xff]  ;;  %v360_v28 = vld [vmem:[%s914_s7 + $0x28] sm:$0xff]  ;;  %v455_v33 = vld [vmem:[#allocation7] ss:$0 sm:$0xff] }
  0x75   :  { %v558_v29 = vpack.c.bf16 %v360_v28, %v359_v27  ;;  %v361_v38 = vld [vmem:[%s914_s7 + $0x30] sm:$0xff]  ;;  %v362_v39 = vld [vmem:[%s914_s7 + $0x38] sm:$0xff] }
  0x76   :  { %494 = vmatpush3.msra.mxu1 %v105_v12  ;;  %v561_v40 = vpack.c.bf16 %v362_v39, %v361_v38  ;;  %v456_v41 = vld [vmem:[#allocation9] ss:$0 sm:$0xff]  ;;  %v458_v46 = vld [vmem:[#allocation10] ss:$0 sm:$0xff] }
  0x77   :  { %496 = vmatmul.mubr.msk.f32.vlgmr.msra.gmra.mrb[0].mxu1 %vm182_vm2, %v102_v13  ;;  %551 = vmatprep.subr.bf16.mxu1 %v718_v0 }
  0x78   :  { %544 = vmatpush3.bf16.msra.mxu0 %v543_v14  ;;  %533 = vmatprep.mubr.msk.f32.mxu1 %vm720_vm0, %v719_v1 }
  0x79   :  { %545 = vmatprep.subr.bf16.mxu0 %v718_v0  ;;  %553 = vmatpush3.bf16.msra.mxu1 %v552_v24 }
  0x7a   :  { %554 = vmatprep.subr.bf16.mxu1 %v718_v0 }
  0x7c   :  { %547 = vmatpush3.bf16.msra.mxu0 %v546_v17 }
  0x7d   :  { %548 = vmatprep.subr.bf16.mxu0 %v718_v0  ;;  %556 = vmatpush3.bf16.msra.mxu1 %v555_v26 }
  0x7e   :  { %557 = vmatprep.subr.bf16.mxu1 %v718_v0 }
  0x80   :  { %550 = vmatpush3.bf16.msra.mxu0 %v549_v20 }
  0x81   :  { %559 = vmatpush3.bf16.msra.mxu1 %v558_v29 }
  0x82   :  { %560 = vmatprep.subr.bf16.mxu1 %v718_v0 }
  0x85   :  { %562 = vmatpush3.bf16.msra.mxu1 %v561_v40 }
 0x144   :  { %v178_v30 = vpop.f32.mrb[0].mxu0 }
 0x145   :  { %v488_v31 = vpop.f32.mrb[1].mxu0 }
 0x14a   :  { %v252_v32 = vpop.f32.mrb[0].mxu1 }
 0x14b   :  { %v253_v34 = vadd.f32 %v252_v32, %v178_v30  ;;  %v497_v35 = vpop.f32.mrb[1].mxu1 }
 0x14d   :  { %v263_v36 = vadd.f32 %v455_v33, %v253_v34 }
 0x14f   :  { %v264_v37 = vmax.f32 %v263_v36, 0.0 }
 0x151   :  { %515 = vmatmul.mubr.msk.f32.vlgmr.msra.gmra.mrb[2].mxu0 %vm280_vm3, %v264_v37 }
 0x224   :  { %v350_v42 = vpop.f32.mrb[2].mxu0 }
 0x225   :  { %v351_v43 = vadd.f32 %v456_v41, %v350_v42  ;;  %v516_v44 = vpop.f32.mrb[3].mxu0 }
 0x227   :  { %v354_v45 = vmax.f32 %v351_v43, 0.0 }
 0x229   :  { %534 = vmatmul.mubr.msk.f32.vlgmr.msra.gmra.mrb[2].mxu1 %vm280_vm3, %v354_v45 }
 0x2fc   :  { %v439_v47 = vpop.f32.mrb[2].mxu1 }
 0x2fd   :  { %v440_v48 = vadd.f32 %v458_v46, %v439_v47  ;;  %v535_v49 = vpop.f32.mrb[3].mxu1 }
 0x2ff   :  { %444 = vst.msk [vmem:[%s916_s9] sm:$0xff] %vm443_vm4, %v440_v48 }
 0x300   :  { %449 = vsyncpa [#allocation3], 1 }
 0x301   :  { %450 = vsyncpa [#allocation5], 1 }
 0x302   :  { %451 = vsyncpa [#allocation8], 1 }
 0x303   :  { %452 = vsyncpa [#allocation11], 1 }

</bundles_post_ra>
